<compile_context>
chip_gen: v7x
topology: tpu7x:2x2x1
jax: 0.10.0
libtpu: 0.0.40
codegen_flags: <defaults>
</compile_context>

<pallas_src>
import functools

import jax
import jax.numpy as jnp
from jax.experimental import pallas as pl
from jax.experimental.pallas import tpu as pltpu


def _round_up(x: int, m: int) -> int:
    return (x + m - 1) // m * m


def _cdiv(a: int, b: int) -> int:
    return -(-a // b)


def _ln_rnn_cell_kernel(xh_ref, w_ref, gamma_ref, beta_ref, o_ref, *, hidden_size: int):
    # xh_ref:    (b_tile, K)        K = input_size + hidden_size, cat([x, h], 1)
    # w_ref:     (K, H_pad)         zero-padded beyond hidden_size (resident in VMEM)
    # gamma_ref: (1, H_pad)         zero-padded beyond hidden_size
    # beta_ref:  (1, H_pad)         zero-padded beyond hidden_size
    # o_ref:     (b_tile, H_pad)    lane-dense output (padding sliced off by wrapper)

    # Single MXU pass; operands stay in their native dtype, accumulation is f32.
    # Padded columns of z are exactly 0 (padded weight columns are 0).
    z = jnp.dot(xh_ref[...], w_ref[...], preferred_element_type=jnp.float32)

    inv_h = jnp.float32(1.0 / hidden_size)
    # One-pass statistics over the *real* H features (padded columns contribute 0).
    s1 = jnp.sum(z, axis=-1, keepdims=True)
    s2 = jnp.sum(z * z, axis=-1, keepdims=True)
    mean = s1 * inv_h
    var = s2 * inv_h - mean * mean          # biased variance, matches torch LayerNorm
    inv_std = jax.lax.rsqrt(var + jnp.float32(1e-5))

    gamma = gamma_ref[...].astype(jnp.float32)
    beta = beta_ref[...].astype(jnp.float32)
    a = (z - mean) * inv_std * gamma + beta  # padded cols: gamma=beta=0 -> tanh(0)=0

    if o_ref.dtype == jnp.bfloat16:
        # v6e/v7x: bf16 EUP roughly doubles tanh throughput; output is bf16 anyway.
        # (On v5e keep f32 activations/outputs — its EUP has no bf16 path.)
        o_ref[...] = jnp.tanh(a.astype(jnp.bfloat16))
    else:
        o_ref[...] = jnp.tanh(a).astype(o_ref.dtype)


def prepare_layer_norm_rnn_cell_params(weight, gamma, beta, input_size, *, param_dtype=None):
    """One-time parameter prep (do at init, NOT per step).

    weight: (hidden_size, input_size + hidden_size)   -- PyTorch nn.Linear layout
    gamma, beta: (hidden_size,)                       -- LayerNorm affine params
    param_dtype: e.g. jnp.bfloat16 to halve weight HBM/VMEM bytes (changes numerics
                 slightly vs. the f32 torch module, so default keeps the input dtype).
    """
    hidden_size = weight.shape[0]
    assert weight.shape[1] > input_size and weight.shape == (hidden_size, input_size + hidden_size)

    h_pad = _round_up(hidden_size, 128)              # lane-dense output width
    w = weight.T                                     # (K, H)
    if param_dtype is not None:
        w = w.astype(param_dtype)
    pad_n = h_pad - hidden_size
    if pad_n:
        w = jnp.pad(w, ((0, 0), (0, pad_n)))
        gamma = jnp.pad(gamma, (0, pad_n))
        beta = jnp.pad(beta, (0, pad_n))
    return {
        "w": w,                                      # (K, H_pad)
        "gamma": gamma.reshape(1, h_pad),
        "beta": beta.reshape(1, h_pad),
        "input_size": int(input_size),
        "hidden_size": int(hidden_size),
    }


def layer_norm_rnn_cell(inp, hidden, params, *, b_tile_max=256):
    """Hot path: one cell step.

    inp:    (B, input_size)
    hidden: (B, hidden_size)
    params: output of prepare_layer_norm_rnn_cell_params
    returns (B, hidden_size)
    """
    w = params["w"]
    gamma2 = params["gamma"]
    beta2 = params["beta"]
    input_size = params["input_size"]
    hidden_size = params["hidden_size"]

    B = inp.shape[0]
    K = input_size + hidden_size
    h_pad = w.shape[1]
    out_dtype = inp.dtype
    itemsize = jnp.dtype(out_dtype).itemsize
    sublane = {4: 8, 2: 16, 1: 32}.get(itemsize, 8)

    # --- batch tiling: minimal padding; >= 2 tiles for large B (v7x megacore) ----------
    n_tiles = max(1, _cdiv(B, b_tile_max))
    if n_tiles == 1 and B >= 2 * max(sublane, 64):
        n_tiles = 2
    b_tile = _round_up(_cdiv(B, n_tiles), sublane)
    b_pad = n_tiles * b_tile

    # Single (B, K) activation slab -> one input DMA stream, one MXU dot in-kernel.
    xh = jnp.concatenate([inp, hidden], axis=1)
    if b_pad != B:
        xh = jnp.pad(xh, ((0, b_pad - B), (0, 0)))

    # --- explicit VMEM budget (scoped defaults: 16 MiB v5e, 32 MiB v6e/v7x) ------------
    w_bytes = w.size * jnp.dtype(w.dtype).itemsize
    ln_bytes = (gamma2.size + beta2.size) * jnp.dtype(gamma2.dtype).itemsize
    io_bytes = 2 * b_tile * (K + h_pad) * itemsize      # double-buffered xh + out tiles
    work_bytes = 4 * b_tile * h_pad * 4                 # f32 z + elementwise headroom
    vmem_limit = int(max(w_bytes + ln_bytes + io_bytes + work_bytes + (4 << 20), 32 << 20))

    kernel = functools.partial(_ln_rnn_cell_kernel, hidden_size=hidden_size)

    out = pl.pallas_call(
        kernel,
        out_shape=jax.ShapeDtypeStruct((b_pad, h_pad), out_dtype),
        grid_spec=pltpu.PrefetchScalarGridSpec(
            num_scalar_prefetch=0,
            grid=(n_tiles,),
            in_specs=[
                pl.BlockSpec((b_tile, K), lambda i: (i, 0)),
                # Weight / LN params: constant block index -> fetched once, resident.
                pl.BlockSpec((K, h_pad), lambda i: (0, 0)),
                pl.BlockSpec((1, h_pad), lambda i: (0, 0)),
                pl.BlockSpec((1, h_pad), lambda i: (0, 0)),
            ],
            out_specs=pl.BlockSpec((b_tile, h_pad), lambda i: (i, 0)),
        ),
        compiler_params=pltpu.CompilerParams(
            dimension_semantics=("parallel",),   # batch tiles split across TCs (v7x)
            vmem_limit_bytes=vmem_limit,
        ),
    )(xh, w, gamma2, beta2)

    return out[:B, :hidden_size]


if __name__ == "__main__":
    # Small shapes consistent with the module's forward signature.
    batch = 8
    input_size = 16
    hidden_size = 32

    key = jax.random.PRNGKey(0)
    k_x, k_h, k_w, k_g, k_b = jax.random.split(key, 5)

    inp = jax.random.normal(k_x, (batch, input_size), dtype=jnp.float32)
    hidden = jax.random.normal(k_h, (batch, hidden_size), dtype=jnp.float32)

    # nn.Linear weight (out, in), no bias (layer_norm_enabled=True); LayerNorm affine.
    fan_in = input_size + hidden_size
    bound = 1.0 / (fan_in ** 0.5)
    weight = jax.random.uniform(
        k_w, (hidden_size, fan_in), minval=-bound, maxval=bound, dtype=jnp.float32)
    gamma = 1.0 + 0.1 * jax.random.normal(k_g, (hidden_size,), dtype=jnp.float32)
    beta = 0.1 * jax.random.normal(k_b, (hidden_size,), dtype=jnp.float32)

    # One-time prep (in recurrent use this happens at parameter init, not per step).
    params = prepare_layer_norm_rnn_cell_params(weight, gamma, beta, input_size)

    out = layer_norm_rnn_cell(inp, hidden, params)
    out = jax.block_until_ready(out)

    # Reference check in plain JAX (original PyTorch module semantics).
    z_ref = jnp.concatenate([inp, hidden], axis=1) @ weight.T
    mu = jnp.mean(z_ref, axis=-1, keepdims=True)
    var = jnp.mean((z_ref - mu) ** 2, axis=-1, keepdims=True)
    ref = jnp.tanh((z_ref - mu) / jnp.sqrt(var + 1e-5) * gamma + beta)

    assert out.shape == (batch, hidden_size)
    max_err = float(jnp.max(jnp.abs(out - ref)))
    assert jnp.allclose(out, ref, atol=1e-4, rtol=1e-4), max_err

    print("KERNEL_OK")
</pallas_src>

<mosaic_0001>
module attributes {stable_mosaic.version = 11 : i64} {
  func.func @_ln_rnn_cell_kernel(%arg0: i32, %arg1: memref<8x48xf32, #tpu.memory_space<vmem>>, %arg2: memref<48x128xf32, #tpu.memory_space<vmem>>, %arg3: memref<1x128xf32, #tpu.memory_space<vmem>>, %arg4: memref<1x128xf32, #tpu.memory_space<vmem>>, %arg5: memref<8x128xf32, #tpu.memory_space<vmem>>) attributes {dimension_semantics = [#tpu.dimension_semantics<parallel>], iteration_bounds = array<i64: 1>, scalar_prefetch = 0 : i64, scratch_operands = 0 : i64, tpu.core_type = #tpu.core_type<tc>, window_params = [{transform_indices = @transform_0, window_bounds = array<i64: 8, 48>}, {pipeline_mode = #tpu.pipeline_mode<synchronous>, transform_indices = @transform_1, window_bounds = array<i64: 48, 128>}, {pipeline_mode = #tpu.pipeline_mode<synchronous>, transform_indices = @transform_2, window_bounds = array<i64: 1, 128>}, {pipeline_mode = #tpu.pipeline_mode<synchronous>, transform_indices = @transform_3, window_bounds = array<i64: 1, 128>}, {transform_indices = @transform_4, window_bounds = array<i64: 8, 128>}]} {
    %c0 = arith.constant 0 : index
    %c0_0 = arith.constant 0 : index
    %0 = vector.load %arg1[%c0, %c0_0] : memref<8x48xf32, #tpu.memory_space<vmem>>, vector<8x48xf32>
    %c0_1 = arith.constant 0 : index
    %c0_2 = arith.constant 0 : index
    %1 = vector.load %arg2[%c0_1, %c0_2] : memref<48x128xf32, #tpu.memory_space<vmem>>, vector<48x128xf32>
    %cst = arith.constant dense<0.000000e+00> : vector<8x128xf32>
    %2 = tpu.matmul %0, %1, %cst {dimension_numbers = #tpu.dot_dimension_numbers<[1], [0], [0], [1], [0, 0, 1, 1], [], []>} : vector<8x48xf32>, vector<48x128xf32>, vector<8x128xf32> -> vector<8x128xf32>
    %cst_3 = arith.constant dense<0.000000e+00> : vector<8xf32>
    %3 = vector.multi_reduction <add>, %2, %cst_3 [1] : vector<8x128xf32> to vector<8xf32>
    %4 = vector.shape_cast %3 : vector<8xf32> to vector<8x1xf32>
    %5 = arith.mulf %2, %2 : vector<8x128xf32>
    %cst_4 = arith.constant dense<0.000000e+00> : vector<8xf32>
    %6 = vector.multi_reduction <add>, %5, %cst_4 [1] : vector<8x128xf32> to vector<8xf32>
    %7 = vector.shape_cast %6 : vector<8xf32> to vector<8x1xf32>
    %cst_5 = arith.constant 3.125000e-02 : f32
    %8 = vector.broadcast %cst_5 : f32 to vector<8x1xf32>
    %9 = arith.mulf %4, %8 : vector<8x1xf32>
    %cst_6 = arith.constant 3.125000e-02 : f32
    %10 = vector.broadcast %cst_6 : f32 to vector<8x1xf32>
    %11 = arith.mulf %7, %10 : vector<8x1xf32>
    %12 = arith.mulf %9, %9 : vector<8x1xf32>
    %13 = arith.subf %11, %12 : vector<8x1xf32>
    %cst_7 = arith.constant 9.99999974E-6 : f32
    %14 = vector.broadcast %cst_7 : f32 to vector<8x1xf32>
    %15 = arith.addf %13, %14 : vector<8x1xf32>
    %16 = math.rsqrt %15 : vector<8x1xf32>
    %c0_8 = arith.constant 0 : index
    %c0_9 = arith.constant 0 : index
    %17 = vector.load %arg3[%c0_8, %c0_9] : memref<1x128xf32, #tpu.memory_space<vmem>>, vector<1x128xf32>
    %c0_10 = arith.constant 0 : index
    %c0_11 = arith.constant 0 : index
    %18 = vector.load %arg4[%c0_10, %c0_11] : memref<1x128xf32, #tpu.memory_space<vmem>>, vector<1x128xf32>
    %19 = vector.broadcast %9 : vector<8x1xf32> to vector<8x128xf32>
    %20 = arith.subf %2, %19 : vector<8x128xf32>
    %21 = vector.broadcast %16 : vector<8x1xf32> to vector<8x128xf32>
    %22 = arith.mulf %20, %21 : vector<8x128xf32>
    %23 = vector.broadcast %17 : vector<1x128xf32> to vector<8x128xf32>
    %24 = arith.mulf %22, %23 : vector<8x128xf32>
    %25 = vector.broadcast %18 : vector<1x128xf32> to vector<8x128xf32>
    %26 = arith.addf %24, %25 : vector<8x128xf32>
    %27 = math.tanh %26 : vector<8x128xf32>
    %c0_12 = arith.constant 0 : index
    %c0_13 = arith.constant 0 : index
    %28 = vector.load %arg5[%c0_12, %c0_13] : memref<8x128xf32, #tpu.memory_space<vmem>>, vector<8x128xf32>
    tpu.vector_store %arg5[%c0_12, %c0_13], %27 {strides = array<i32>} : memref<8x128xf32, #tpu.memory_space<vmem>>, vector<8x128xf32>,
    return
  }
  func.func @transform_0(%arg0: i32) -> (i32, i32) {
    %c0_i32 = arith.constant 0 : i32
    %c0_i32_0 = arith.constant 0 : i32
    return %arg0, %c0_i32 : i32, i32
  }
  func.func @transform_1(%arg0: i32) -> (i32, i32) {
    %c0_i32 = arith.constant 0 : i32
    %c0_i32_0 = arith.constant 0 : i32
    %c0_i32_1 = arith.constant 0 : i32
    return %c0_i32, %c0_i32_0 : i32, i32
  }
  func.func @transform_2(%arg0: i32) -> (i32, i32) {
    %c0_i32 = arith.constant 0 : i32
    %c0_i32_0 = arith.constant 0 : i32
    %c0_i32_1 = arith.constant 0 : i32
    return %c0_i32, %c0_i32_0 : i32, i32
  }
  func.func @transform_3(%arg0: i32) -> (i32, i32) {
    %c0_i32 = arith.constant 0 : i32
    %c0_i32_0 = arith.constant 0 : i32
    %c0_i32_1 = arith.constant 0 : i32
    return %c0_i32, %c0_i32_0 : i32, i32
  }
  func.func @transform_4(%arg0: i32) -> (i32, i32) {
    %c0_i32 = arith.constant 0 : i32
    %c0_i32_0 = arith.constant 0 : i32
    return %arg0, %c0_i32 : i32, i32
  }
}

</mosaic_0001>

<bundles_post_ra>
// kernel: tpu_custom_call.1
= control target key start
LH: loop header
LB: loop body
LE: loop exit
PB: predicated region body
PF: predicated region fallthrough
CT: control target
= control target key end

     0   :  { %9 = vsyncpa [#allocation3], 0  ;;  %s372_s0 = inlined_call_operand.hbm [shape: f32[8,48], index: 0, kind: input, shape index: {}]   ;;  %s373_s1 = inlined_call_operand.hbm [shape: f32[48,128], index: 1, kind: input, shape index: {}]   ;;  %s374_s2 = inlined_call_operand.vmem [shape: f32[1,128], index: 2, kind: input, shape index: {}]   ;;  %s375_s3 = inlined_call_operand.vmem [shape: f32[1,128], index: 3, kind: input, shape index: {}]   ;;  %s376_s4 = inlined_call_operand.hbm [shape: f32[8,128], index: 4, kind: output, shape index: {}]  }
   0x1   :  { %10 = vsyncpa [#allocation6], 0 }
   0x2   :  { %11 = vsyncpa [#allocation4], 0  ;;  %s290_s15 = smov [#allocation2]   ;;  %s291_s17 = smov [#allocation5]  }
   0x3   :  { %s18_s16 = sshll.u32 %s290_s15, 4  ;;  %s27_s18 = sshll.u32 %s291_s17, 4  ;;  %s19_s16 = int_to_ptr.vmem [resolvable:$true] %s18_s16  ;;  %s323_s18 = int_to_ptr.vmem [resolvable:$true] %s27_s18 }
   0x4   :  { %s218_s21 = scalar_lea.hbm %s372_s0, 128 }
   0x5   :  { %p219_p0 = scmp.ne.s32.totalorder %s372_s0, %s218_s21  ;;  %p222_p1 = scmp.lt.u32.totalorder %s218_s21, %s372_s0 }
   0x7   :  { %p224_p2 = pnand %p222_p1, %p219_p0 }
   0x9   :  { %227 = shalt.err (!%p224_p2)
}
   0xa   :  { %s228_s26 = scalar_lea.vmem %s19_s16, 128  ;;  %p233_p4 = scmp.lt.s32.totalorder %s19_s16, %s19_s16 }
   0xb   :  { %p229_p3 = scmp.ne.s32.totalorder %s19_s16, %s228_s26  ;;  %p234_p5 = scmp.lt.s32.totalorder %s228_s26, %s228_s26 }
   0xd   :  { %p235_p6 = por %p234_p5, %p233_p4 }
   0xf   :  { %p236_p7 = pnand %p235_p6, %p229_p3 }
  0x11   :  { %239 = shalt.err (!%p236_p7)
}
  0x12   :  { %21 = dma.hbm_to_vmem [thread:$0]  %s372_s0, 128, %s19_s16, [#allocation3]  }
  0x13   :  { %s240_s5 = scalar_lea.hbm %s373_s1, 768 }
  0x14   :  { %p241_p8 = scmp.ne.s32.totalorder %s373_s1, %s240_s5  ;;  %p244_p9 = scmp.lt.u32.totalorder %s240_s5, %s373_s1 }
  0x16   :  { %p246_p10 = pnand %p244_p9, %p241_p8 }
  0x18   :  { %249 = shalt.err (!%p246_p10)
}
  0x19   :  { %s250_s10 = scalar_lea.vmem %s323_s18, 768  ;;  %p255_p12 = scmp.lt.s32.totalorder %s323_s18, %s323_s18 }
  0x1a   :  { %p251_p11 = scmp.ne.s32.totalorder %s323_s18, %s250_s10  ;;  %p256_p13 = scmp.lt.s32.totalorder %s250_s10, %s250_s10 }
  0x1c   :  { %p257_p0 = por %p256_p13, %p255_p12 }
  0x1e   :  { %p258_p1 = pnand %p257_p0, %p251_p11 }
  0x20   :  { %261 = shalt.err (!%p258_p1)
}
  0x21   :  { %s292_s0 = smov 128   ;;  %s293_s11 = smov 8  }
  0x22   :  { %33 = dma.hbm_to_vmem [thread:$0]  %s373_s1, 768, %s323_s18, [#allocation6], %s292_s0, %s292_s0, %s293_s11  }
  0x23   :  { %284 = dma.done.wait [#allocation3], 128  }
  0x24   :  { %285 = vsyncadd [#allocation3], 4294967168 }
  0x25   :  { %286 = dma.done.wait [#allocation6], 768  }
  0x26   :  { %287 = vsyncadd [#allocation6], 4294966528  ;;  %v294_v0 = vmov 0.0|0.0   ;;  %vm295_vm0 = vmmov 0   ;;  %v296_v1 = vmov 0.0   ;;  %v45_v2 = vld [vmem:[#allocation5] sm:$0xff] }
  0x27   :  { %197 = vmatprep.subr.bf16.mxu0 %v294_v0  ;;  %194 = vmatprep.mubr.msk.f32.mxu0 %vm295_vm0, %v296_v1  ;;  %v46_v3 = vld [vmem:[#allocation5 + $0x8] sm:$0xff]  ;;  %v47_v4 = vld [vmem:[#allocation5 + $0x10] sm:$0xff]  ;;  %v48_v6 = vld [vmem:[#allocation5 + $0x18] sm:$0xff]  ;;  %vm51_vm1 = vcmask 392192   ;;  %s297_s17 = smov [#allocation7]  }
  0x28   :  { %v198_v5 = vpack.c.bf16 %v46_v3, %v45_v2  ;;  %v201_v7 = vpack.c.bf16 %v48_v6, %v47_v4  ;;  %v49_v8 = vld [vmem:[#allocation5 + $0x20] sm:$0xff]  ;;  %v50_v9 = vld [vmem:[#allocation5 + $0x28] sm:$0xff]  ;;  %v44_v11 = vld [vmem:[#allocation2] sm:$0xff]  ;;  %s162_s18 = sshll.u32 %s297_s17, 4  ;;  %s163_s18 = int_to_ptr.vmem [resolvable:$true] %s162_s18 }
  0x29   :  { %v204_v10 = vpack.c.bf16 %v50_v9, %v49_v8  ;;  %v173_v24 = vld [vmem:[%s374_s2] ss:$0 sm:$0xff]  ;;  %s262_s19 = scalar_lea.vmem %s163_s18, 128  ;;  %p267_p3 = scmp.lt.s32.totalorder %s163_s18, %s163_s18 }
  0x2a   :  { %199 = vmatpush3.bf16.msra.mxu0 %v198_v5  ;;  %v174_v26 = vld [vmem:[%s375_s3] ss:$0 sm:$0xff]  ;;  %p263_p2 = scmp.ne.s32.totalorder %s163_s18, %s262_s19  ;;  %p268_p4 = scmp.lt.s32.totalorder %s262_s19, %s262_s19 }
  0x2b   :  { %200 = vmatprep.subr.bf16.mxu0 %v294_v0 }
  0x2c   :  { %p269_p5 = por %p268_p4, %p267_p3 }
  0x2e   :  { %202 = vmatpush3.bf16.msra.mxu0 %v201_v7  ;;  %p270_p6 = pnand %p269_p5, %p263_p2 }
  0x2f   :  { %203 = vmatprep.subr.bf16.mxu0 %v294_v0 }
  0x32   :  { %205 = vmatpush3.bf16.msra.mxu0 %v204_v10 }
  0x35   :  { %195 = vmatmul.mubr.msk.f32.vlgmr.msra.gmra.mrb[0].mxu0 %vm51_vm1, %v44_v11 }
 0x108   :  { %v121_v12 = vpop.f32.mrb[0].mxu0 }
 0x109   :  { %125 = vadd.xlane.f32.xlu0 %v121_v12  ;;  %v196_v13 = vpop.f32.mrb[1].mxu0  ;;  %v127_v14 = vmul.f32 %v121_v12, %v121_v12 }
 0x10d   :  { %128 = vadd.xlane.f32.xlu0 %v127_v14 }
 0x196   :  { %v126_v15 = vpop.xlane.xlu0 %125 }
 0x197   :  { %v130_v16 = vmul.f32 0.03125, %v126_v15 }
 0x199   :  { %v132_v18 = vmul.f32 %v130_v16, %v130_v16  ;;  %v138_v22 = vsub.f32 %v121_v12, %v130_v16 }
 0x19a   :  { %v129_v17 = vpop.xlane.xlu0 %128 }
 0x19b   :  { %v131_v19 = vmul.f32 0.03125, %v129_v17 }
 0x19d   :  { %v133_v20 = vsub.f32 %v131_v19, %v132_v18 }
 0x19f   :  { %v134_v21 = vadd.f32 1e-05, %v133_v20 }
 0x1a1   :  { %214 = vrsqrt.f32 %v134_v21 }
 0x1ab   :  { %v215_v23 = vpop.eup %214 }
 0x1ac   :  { %v139_v25 = vmul.f32 %v215_v23, %v138_v22 }
 0x1ae   :  { %v146_v27 = vmul.f32 %v173_v24, %v139_v25 }
 0x1b0   :  { %v153_v28 = vadd.f32 %v174_v26, %v146_v27 }
 0x1b2   :  { %216 = vtanh.f32 %v153_v28 }
 0x1bc   :  { %v217_v29 = vpop.eup %216 }
 0x1bd   :  { %155 = vst [vmem:[#allocation7] sm:$0xff] %v217_v29 }
 0x1be   :  { %273 = shalt.err (!%p270_p6)
}
 0x1bf   :  { %s274_s21 = scalar_lea.hbm %s376_s4, 128 }
 0x1c0   :  { %p275_p7 = scmp.ne.s32.totalorder %s376_s4, %s274_s21  ;;  %p278_p8 = scmp.lt.u32.totalorder %s274_s21, %s376_s4 }
 0x1c2   :  { %p280_p9 = pnand %p278_p8, %p275_p7 }
 0x1c4   :  { %283 = shalt.err (!%p280_p9)
}
 0x1c5   :  { %165 = dma.vmem_to_hbm [thread:$0]  %s163_s18, 128, %s376_s4, [#allocation4]  }
 0x1c6   :  { %288 = dma.done.wait [#allocation4], 128  }
 0x1c7   :  { %289 = vsyncadd [#allocation4], 4294967168 }
 0x1c8   :  { %169 = vsyncpa [#allocation3], 1 }
 0x1c9   :  { %170 = vsyncpa [#allocation6], 1 }
 0x1ca   :  { %171 = vsyncpa [#allocation4], 1 }

</bundles_post_ra>
